<compile_context>
chip_gen: v7x
topology: tpu7x:2x2x1
jax: 0.10.0
libtpu: 0.0.40
codegen_flags: <defaults>
</compile_context>

<pallas_src>
import functools

import jax
import jax.numpy as jnp
from jax.experimental import pallas as pl
from jax.experimental.pallas import tpu as pltpu

LANE = 128  # vreg lane width; keep the last (fast) axis lane-dense


def _identity_kernel(x_ref, o_ref):
    # Pure pass-through copy of the current (block_m, LANE) tile.
    o_ref[...] = x_ref[...]


@functools.partial(jax.jit, static_argnames=("block_m",))
def _identity_impl(x, *, block_m=256):
    """Identity copy through a Pallas kernel. Accepts any shape/dtype array."""
    orig_shape = x.shape
    n = x.size
    if n == 0:
        return x

    # ---- layout glue (wrapper only, no compute): flatten to a lane-dense
    #      (rows, 128) slab, padded so block_m tiles it exactly. ----
    m = pl.cdiv(n, LANE)                       # rows needed for the payload
    bm = min(block_m, m)
    bm = max(8, (bm // 8) * 8)                 # sublane-aligned row tile
    m_padded = pl.cdiv(m, bm) * bm             # rows after tiling pad
    total = m_padded * LANE

    flat = x.reshape(-1)
    if total != n:
        flat = jnp.pad(flat, (0, total - n))
    x2d = flat.reshape(m_padded, LANE)

    grid = (m_padded // bm,)

    out2d = pl.pallas_call(
        _identity_kernel,
        out_shape=jax.ShapeDtypeStruct((m_padded, LANE), x2d.dtype),
        grid=grid,
        in_specs=[pl.BlockSpec((bm, LANE), lambda i: (i, 0))],
        out_specs=pl.BlockSpec((bm, LANE), lambda i: (i, 0)),
        compiler_params=pltpu.CompilerParams(
            dimension_semantics=("parallel",)),
    )(x2d)

    return out2d.reshape(-1)[:n].reshape(orig_shape)


def identity_map(x, *args, block_m=256, **kwargs):
    """Mirrors IdentityMap.forward(x, *args, **kwargs) -> x.

    Extra positional / keyword args are accepted and ignored, exactly like
    the PyTorch module.
    """
    del args, kwargs
    return _identity_impl(x, block_m=block_m)


# TODO(synk): the `config` property ({'mm_projector_type': 'identity'}) is
# Python-side metadata with no kernel equivalent; it is intentionally omitted.


if __name__ == "__main__":
    key = jax.random.PRNGKey(0)

    # Shape consistent with a vision-feature tensor fed to the projector.
    x = jax.random.normal(key, (2, 4, 16, 16), dtype=jnp.float32)
    out = jax.block_until_ready(identity_map(x))
    assert out.shape == x.shape and out.dtype == x.dtype
    assert jnp.array_equal(out, x), float(jnp.max(jnp.abs(out - x)))

    # Odd, non-lane-aligned shape exercises the pad + clip tail path.
    x2 = jax.random.normal(jax.random.PRNGKey(0), (3, 7, 5), dtype=jnp.float32)
    out2 = jax.block_until_ready(identity_map(x2, "extra_arg", unused_kw=1))
    assert jnp.array_equal(out2, x2)

    print("KERNEL_OK")
</pallas_src>

<mosaic_0001>
module attributes {stable_mosaic.version = 11 : i64} {
  func.func @_identity_kernel(%arg0: i32, %arg1: memref<16x128xf32, #tpu.memory_space<vmem>>, %arg2: memref<16x128xf32, #tpu.memory_space<vmem>>) attributes {dimension_semantics = [#tpu.dimension_semantics<parallel>], iteration_bounds = array<i64: 1>, scalar_prefetch = 0 : i64, scratch_operands = 0 : i64, tpu.core_type = #tpu.core_type<tc>, window_params = [{transform_indices = @transform_0, window_bounds = array<i64: 16, 128>}, {transform_indices = @transform_1, window_bounds = array<i64: 16, 128>}]} {
    %c0 = arith.constant 0 : index
    %c0_0 = arith.constant 0 : index
    %0 = vector.load %arg1[%c0, %c0_0] : memref<16x128xf32, #tpu.memory_space<vmem>>, vector<16x128xf32>
    %c0_1 = arith.constant 0 : index
    %c0_2 = arith.constant 0 : index
    %1 = vector.load %arg2[%c0_1, %c0_2] : memref<16x128xf32, #tpu.memory_space<vmem>>, vector<16x128xf32>
    tpu.vector_store %arg2[%c0_1, %c0_2], %0 {strides = array<i32>} : memref<16x128xf32, #tpu.memory_space<vmem>>, vector<16x128xf32>,
    return
  }
  func.func @transform_0(%arg0: i32) -> (i32, i32) {
    %c0_i32 = arith.constant 0 : i32
    %c0_i32_0 = arith.constant 0 : i32
    return %arg0, %c0_i32 : i32, i32
  }
  func.func @transform_1(%arg0: i32) -> (i32, i32) {
    %c0_i32 = arith.constant 0 : i32
    %c0_i32_0 = arith.constant 0 : i32
    return %arg0, %c0_i32 : i32, i32
  }
}

</mosaic_0001>

<bundles_post_ra>
// kernel: _identity_impl.1
= control target key start
LH: loop header
LB: loop body
LE: loop exit
PB: predicated region body
PF: predicated region fallthrough
CT: control target
= control target key end

     0   :  { %s38_s0 = inlined_call_operand.vmem [shape: f32[16,128], index: 0, kind: input, shape index: {}]   ;;  %s39_s1 = inlined_call_operand.vmem [shape: f32[16,128], index: 1, kind: output, shape index: {}]  }
   0x1   :  { %v8_v0 = vld [vmem:[%s38_s0] sm:$0xff]  ;;  %v9_v1 = vld [vmem:[%s38_s0 + $0x8] sm:$0xff] }
   0x2   :  { %10 = vst [vmem:[%s39_s1] sm:$0xff] %v8_v0  ;;  %11 = vst [vmem:[%s39_s1 + $0x8] sm:$0xff] %v9_v1 }

</bundles_post_ra>
